<compile_context>
chip_gen: v5e
topology: v5e:2x2
jax: 0.10.0
libtpu: 0.0.40
codegen_flags: <defaults>
</compile_context>

<pallas_src>
import functools
import math

import jax
import jax.numpy as jnp
from jax.experimental import pallas as pl
from jax.experimental.pallas import tpu as pltpu


# ----------------------------- kernel --------------------------------------- #

def agent_embedding_kernel(x_ref, w_ref, b_ref, out_ref):
    # x_ref : [R, Kp]  packed rows (R = Bt*M), Kp = round_up(3E+8, 128), bf16
    # w_ref : [Kp, E]  fused weights (bf16, zero rows in the pad region)
    # b_ref : [1, E]   fused bias (f32)
    # out   : [R, E]   f32
    y = jnp.dot(x_ref[...], w_ref[...], preferred_element_type=jnp.float32)
    out_ref[...] = (y + b_ref[...]).astype(out_ref.dtype)


# ----------------------------- wrapper --------------------------------------- #

def _round_up(x, m):
    return ((x + m - 1) // m) * m


def agent_embedding_forward(cities_embed, graph_embed, agent_state, params,
                            *, batch_block=None):
    B, M, _ = agent_state.shape
    N, E = cities_embed.shape[-2], cities_embed.shape[-1]

    W_all = params["W_all"]            # [Kp, E], compute dtype (bf16), zero pad rows
    b_all = params["b_all"]            # [1, E], f32
    cdtype = W_all.dtype
    Kp = W_all.shape[0]
    K = 3 * E + 8

    # --- glue: depot-position gather (PyTorch fancy indexing) + input packing ---
    idx = agent_state[:, :, :2].astype(jnp.int32)                        # [B, M, 2]
    cities_expand = jnp.broadcast_to(cities_embed, (B, N, E))
    depot_pos = cities_expand[jnp.arange(B)[:, None, None], idx, :]      # [B, M, 2, E]
    depot_pos = depot_pos.reshape(B, M, 2 * E)
    feats = agent_state[:, :, 2:10]                                      # [B, M, 8]
    graph_b = jnp.broadcast_to(graph_embed.reshape(B, 1, E), (B, M, E))  # [B, M, E]
    pad = jnp.zeros((B, M, Kp - K), agent_state.dtype)                   # lane-align K
    x_in = jnp.concatenate([depot_pos, feats, graph_b, pad], axis=-1)    # [B, M, Kp]
    x_in = x_in.reshape(B * M, Kp).astype(cdtype)                        # row-packed slab

    # Default: one tile holding every batch row (single grid step, single dispatch).
    # For large B, pass batch_block to shard the (parallel) grid across TensorCores
    # (v7x megacore).  # TODO(synk): at very large B*M, also tile the K/E dims.
    Bt = B if batch_block is None else batch_block
    assert B % Bt == 0, "batch_block must divide B"
    R = Bt * M
    assert (R % 8 == 0) or (Bt == B), "rows per tile must be sublane-aligned"

    out2d = pl.pallas_call(
        agent_embedding_kernel,
        out_shape=jax.ShapeDtypeStruct((B * M, E), jnp.float32),
        grid=(B // Bt,),
        in_specs=[
            pl.BlockSpec((R, Kp), lambda b: (b, 0)),   # packed activations
            pl.BlockSpec((Kp, E), lambda b: (0, 0)),   # fused weight
            pl.BlockSpec((1, E), lambda b: (0, 0)),    # fused bias
        ],
        out_specs=pl.BlockSpec((R, E), lambda b: (b, 0)),
        compiler_params=pltpu.CompilerParams(
            dimension_semantics=("parallel",),
        ),
    )(x_in, W_all, b_all)
    return out2d.reshape(B, M, E)


# ----------------------------- parameters ------------------------------------ #

def init_params(key, E, compute_dtype=jnp.bfloat16):
    def dense(k, fan_in, fan_out):
        kw, kb = jax.random.split(k)
        bound = 1.0 / math.sqrt(fan_in)
        W = jax.random.uniform(kw, (fan_in, fan_out), jnp.float32, -bound, bound)
        b = jax.random.uniform(kb, (1, fan_out), jnp.float32, -bound, bound)
        return W, b

    keys = jax.random.split(key, 5)
    W_depot, b_depot = dense(keys[0], 2 * E, E)   # depot_pos_embed: Linear(2E, E)
    W_dist, b_dist = dense(keys[1], 5, E)         # distance_cost_embed: Linear(5, E)
    W_scale, b_scale = dense(keys[2], 2, E)       # problem_scale_embed: Linear(2, E)
    W_co, b_co = dense(keys[3], 1, E)             # co_embed: Linear(1, E)
    W_graph, b_graph = dense(keys[4], E, E)       # graph_embed: Linear(E, E)

    # Exact fusion: concat weights along K (order must match the packed input slab),
    # zero-pad K to a lane multiple, sum the biases.
    K = 3 * E + 8
    Kp = _round_up(K, 128)
    W_all = jnp.concatenate([W_depot, W_dist, W_scale, W_co, W_graph], axis=0)   # [K, E]
    W_all = jnp.concatenate([W_all, jnp.zeros((Kp - K, E), jnp.float32)], axis=0)  # [Kp, E]
    b_all = b_depot + b_dist + b_scale + b_co + b_graph                           # [1, E]

    return dict(
        # fused kernel params (weights in compute dtype, bias kept f32)
        W_all=W_all.astype(compute_dtype), b_all=b_all,
        # original unfused f32 params (reference path)
        W_depot=W_depot, b_depot=b_depot,
        W_dist=W_dist, b_dist=b_dist,
        W_scale=W_scale, b_scale=b_scale,
        W_co=W_co, b_co=b_co,
        W_graph=W_graph, b_graph=b_graph,
    )


# ----------------------------- reference (pure JAX, f32) ---------------------- #

def agent_embedding_reference(cities_embed, graph_embed, agent_state, p):
    B, M, _ = agent_state.shape
    N, E = cities_embed.shape[-2], cities_embed.shape[-1]
    gg = graph_embed @ p["W_graph"] + p["b_graph"]                       # [B, 1, E]
    idx = agent_state[:, :, :2].astype(jnp.int32)
    cities_expand = jnp.broadcast_to(cities_embed, (B, N, E))
    depot_pos = cities_expand[jnp.arange(B)[:, None, None], idx, :].reshape(B, M, 2 * E)
    dp = depot_pos @ p["W_depot"] + p["b_depot"]
    dc = agent_state[:, :, 2:7] @ p["W_dist"] + p["b_dist"]
    ps = agent_state[:, :, 7:9] @ p["W_scale"] + p["b_scale"]
    co = agent_state[:, :, 9:10] @ p["W_co"] + p["b_co"]
    return gg + dp + dc + ps + co


# ----------------------------- main ------------------------------------------- #

if __name__ == "__main__":
    B, M, N = 2, 8, 16      # batch, agents, cities
    E = 128                 # embed_dim

    key = jax.random.PRNGKey(0)
    k1, k2, k3, k4, k5 = jax.random.split(key, 5)

    cities_embed = jax.random.normal(k1, (1, N, E), jnp.float32)
    graph = jax.random.normal(k2, (B, 1, E), jnp.float32)
    depot_idx = jax.random.randint(k3, (B, M, 2), 0, N).astype(jnp.float32)
    agent_rest = jax.random.normal(k4, (B, M, 12), jnp.float32)
    agent_state = jnp.concatenate([depot_idx, agent_rest], axis=-1)      # [B, M, 14]

    params = init_params(k5, E)

    fwd = jax.jit(functools.partial(agent_embedding_forward, params=params))
    out = fwd(cities_embed, graph, agent_state)
    jax.block_until_ready(out)

    ref = agent_embedding_reference(cities_embed, graph, agent_state, params)
    assert out.shape == (B, M, E)
    assert jnp.allclose(out, ref, atol=1e-1, rtol=1e-1), \
        float(jnp.max(jnp.abs(out - ref)))
    print("KERNEL_OK")
</pallas_src>

<mosaic_0001>
module attributes {stable_mosaic.version = 11 : i64} {
  func.func @agent_embedding_kernel(%arg0: i32, %arg1: memref<16x512xbf16, #tpu.memory_space<vmem>>, %arg2: memref<512x128xbf16, #tpu.memory_space<vmem>>, %arg3: memref<1x128xf32, #tpu.memory_space<vmem>>, %arg4: memref<16x128xf32, #tpu.memory_space<vmem>>) attributes {dimension_semantics = [#tpu.dimension_semantics<parallel>], iteration_bounds = array<i64: 1>, scalar_prefetch = 0 : i64, scratch_operands = 0 : i64, tpu.core_type = #tpu.core_type<tc>, window_params = [{transform_indices = @transform_0, window_bounds = array<i64: 16, 512>}, {pipeline_mode = #tpu.pipeline_mode<synchronous>, transform_indices = @transform_1, window_bounds = array<i64: 512, 128>}, {pipeline_mode = #tpu.pipeline_mode<synchronous>, transform_indices = @transform_2, window_bounds = array<i64: 1, 128>}, {transform_indices = @transform_3, window_bounds = array<i64: 16, 128>}]} {
    %c0 = arith.constant 0 : index
    %c0_0 = arith.constant 0 : index
    %0 = vector.load %arg1[%c0, %c0_0] : memref<16x512xbf16, #tpu.memory_space<vmem>>, vector<16x512xbf16>
    %c0_1 = arith.constant 0 : index
    %c0_2 = arith.constant 0 : index
    %1 = vector.load %arg2[%c0_1, %c0_2] : memref<512x128xbf16, #tpu.memory_space<vmem>>, vector<512x128xbf16>
    %cst = arith.constant dense<0.000000e+00> : vector<16x128xf32>
    %2 = tpu.matmul %0, %1, %cst {dimension_numbers = #tpu.dot_dimension_numbers<[1], [0], [0], [1], [0, 0, 1, 1], [], []>} : vector<16x512xbf16>, vector<512x128xbf16>, vector<16x128xf32> -> vector<16x128xf32>
    %c0_3 = arith.constant 0 : index
    %c0_4 = arith.constant 0 : index
    %3 = vector.load %arg3[%c0_3, %c0_4] : memref<1x128xf32, #tpu.memory_space<vmem>>, vector<1x128xf32>
    %4 = vector.broadcast %3 : vector<1x128xf32> to vector<16x128xf32>
    %5 = arith.addf %2, %4 : vector<16x128xf32>
    %c0_5 = arith.constant 0 : index
    %c0_6 = arith.constant 0 : index
    %6 = vector.load %arg4[%c0_5, %c0_6] : memref<16x128xf32, #tpu.memory_space<vmem>>, vector<16x128xf32>
    tpu.vector_store %arg4[%c0_5, %c0_6], %5 {strides = array<i32>} : memref<16x128xf32, #tpu.memory_space<vmem>>, vector<16x128xf32>,
    return
  }
  func.func @transform_0(%arg0: i32) -> (i32, i32) {
    %c0_i32 = arith.constant 0 : i32
    %c0_i32_0 = arith.constant 0 : i32
    return %arg0, %c0_i32 : i32, i32
  }
  func.func @transform_1(%arg0: i32) -> (i32, i32) {
    %c0_i32 = arith.constant 0 : i32
    %c0_i32_0 = arith.constant 0 : i32
    %c0_i32_1 = arith.constant 0 : i32
    return %c0_i32, %c0_i32_0 : i32, i32
  }
  func.func @transform_2(%arg0: i32) -> (i32, i32) {
    %c0_i32 = arith.constant 0 : i32
    %c0_i32_0 = arith.constant 0 : i32
    %c0_i32_1 = arith.constant 0 : i32
    return %c0_i32, %c0_i32_0 : i32, i32
  }
  func.func @transform_3(%arg0: i32) -> (i32, i32) {
    %c0_i32 = arith.constant 0 : i32
    %c0_i32_0 = arith.constant 0 : i32
    return %arg0, %c0_i32 : i32, i32
  }
}

</mosaic_0001>

<bundles_post_ra>
// kernel: agent_embedding_forward.1
= control target key start
LH: loop header
LB: loop body
LE: loop exit
PB: predicated region body
PF: predicated region fallthrough
CT: control target
= control target key end

     0   :  { %s734_s0 = inlined_call_operand.vmem [shape: bf16[16,512], index: 0, kind: input, shape index: {}]   ;;  %s735_s1 = inlined_call_operand.vmem [shape: bf16[512,128], index: 1, kind: input, shape index: {}]   ;;  %s736_s2 = inlined_call_operand.vmem [shape: f32[1,128], index: 2, kind: input, shape index: {}]   ;;  %s737_s3 = inlined_call_operand.hbm [shape: f32[16,128], index: 3, kind: output, shape index: {}]  }
   0x1   :  { %v530_v0 = vld [vmem:[%s735_s1 + $0x38] sm:$0xff]  ;;  %v529_v4 = vld [vmem:[%s735_s1 + $0x30] sm:$0xff]  ;;  %v528_v8 = vld [vmem:[%s735_s1 + $0x28] sm:$0xff] }
   0x2   :  { %v538_v1 = vld [vmem:[%s735_s1 + $0x78] sm:$0xff]  ;;  %299 = vmatpush.bf16.msra.mxu0 %v530_v0  ;;  %v537_v5 = vld [vmem:[%s735_s1 + $0x70] sm:$0xff]  ;;  %v536_v9 = vld [vmem:[%s735_s1 + $0x68] sm:$0xff] }
   0x3   :  { %v546_v2 = vld [vmem:[%s735_s1 + $0xb8] sm:$0xff]  ;;  %313 = vmatpush.bf16.msra.mxu1 %v538_v1  ;;  %v545_v6 = vld [vmem:[%s735_s1 + $0xb0] sm:$0xff]  ;;  %v544_v10 = vld [vmem:[%s735_s1 + $0xa8] sm:$0xff] }
   0x4   :  { %v554_v3 = vld [vmem:[%s735_s1 + $0xf8] sm:$0xff]  ;;  %327 = vmatpush.bf16.msra.mxu2 %v546_v2  ;;  %v553_v7 = vld [vmem:[%s735_s1 + $0xf0] sm:$0xff]  ;;  %v552_v11 = vld [vmem:[%s735_s1 + $0xe8] sm:$0xff] }
   0x5   :  { %341 = vmatpush.bf16.msra.mxu3 %v554_v3  ;;  %v527_v12 = vld [vmem:[%s735_s1 + $0x20] sm:$0xff]  ;;  %v526_v16 = vld [vmem:[%s735_s1 + $0x18] sm:$0xff] }
   0x6   :  { %300 = vmatpush.bf16.msra.mxu0 %v529_v4  ;;  %v535_v13 = vld [vmem:[%s735_s1 + $0x60] sm:$0xff]  ;;  %v534_v17 = vld [vmem:[%s735_s1 + $0x58] sm:$0xff] }
   0x7   :  { %314 = vmatpush.bf16.msra.mxu1 %v537_v5  ;;  %v543_v14 = vld [vmem:[%s735_s1 + $0xa0] sm:$0xff] }
   0x8   :  { %328 = vmatpush.bf16.msra.mxu2 %v545_v6  ;;  %v551_v15 = vld [vmem:[%s735_s1 + $0xe0] sm:$0xff] }
   0x9   :  { %342 = vmatpush.bf16.msra.mxu3 %v553_v7 }
   0xa   :  { %301 = vmatpush.bf16.msra.mxu0 %v528_v8 }
   0xb   :  { %315 = vmatpush.bf16.msra.mxu1 %v536_v9 }
   0xc   :  { %329 = vmatpush.bf16.msra.mxu2 %v544_v10 }
   0xd   :  { %343 = vmatpush.bf16.msra.mxu3 %v552_v11 }
   0xe   :  { %302 = vmatpush.bf16.msra.mxu0 %v527_v12 }
   0xf   :  { %316 = vmatpush.bf16.msra.mxu1 %v535_v13 }
  0x10   :  { %8 = vsyncpa [#allocation3], 0  ;;  %330 = vmatpush.bf16.msra.mxu2 %v543_v14  ;;  %v542_v18 = vld [vmem:[%s735_s1 + $0x98] sm:$0xff]  ;;  %v525_v20 = vld [vmem:[%s735_s1 + $0x10] sm:$0xff]  ;;  %s363_s15 = sshll.u32 %s737_s3, 4  ;;  %s587_s16 = smov 8   ;;  %s364_s15 = int_to_ptr.hbm [resolvable:$true] %s363_s15 }
  0x11   :  { %344 = vmatpush.bf16.msra.mxu3 %v551_v15  ;;  %v550_v19 = vld [vmem:[%s735_s1 + $0xd8] sm:$0xff]  ;;  %v533_v21 = vld [vmem:[%s735_s1 + $0x50] sm:$0xff]  ;;  %v524_v24 = vld [vmem:[%s735_s1 + $0x8] sm:$0xff] }
  0x12   :  { %303 = vmatpush.bf16.msra.mxu0 %v526_v16  ;;  %v541_v22 = vld [vmem:[%s735_s1 + $0x90] sm:$0xff]  ;;  %v532_v25 = vld [vmem:[%s735_s1 + $0x48] sm:$0xff]  ;;  %v523_v28 = vld [vmem:[%s735_s1] sm:$0xff] }
  0x13   :  { %317 = vmatpush.bf16.msra.mxu1 %v534_v17  ;;  %v549_v23 = vld [vmem:[%s735_s1 + $0xd0] sm:$0xff]  ;;  %v540_v26 = vld [vmem:[%s735_s1 + $0x88] sm:$0xff]  ;;  %v531_v29 = vld [vmem:[%s735_s1 + $0x40] sm:$0xff] }
  0x14   :  { %331 = vmatpush.bf16.msra.mxu2 %v542_v18  ;;  %v548_v27 = vld [vmem:[%s735_s1 + $0xc8] sm:$0xff]  ;;  %v539_v30 = vld [vmem:[%s735_s1 + $0x80] sm:$0xff]  ;;  %v521_v33 = vld [vmem:[%s734_s0 + $0xc] sm:$0xf0] }
  0x15   :  { %345 = vmatpush.bf16.msra.mxu3 %v550_v19  ;;  %v547_v31 = vld [vmem:[%s735_s1 + $0xc0] sm:$0xff]  ;;  %v379_v35 = vld [vmem:[%s734_s0 + $0x10] sm:$0xf0]  ;;  %v385_v36 = vld [vmem:[%s734_s0 + $0x8] sm:$0xf] }
  0x16   :  { %304 = vmatpush.bf16.msra.mxu0 %v525_v20  ;;  %v377_v32 = vld [vmem:[%s734_s0] sm:$0xf]  ;;  %v519_v34 = vld [vmem:[%s734_s0 + $0x4] sm:$0xf]  ;;  %v522_v37 = vld [vmem:[%s734_s0 + $0x14] sm:$0xf0] }
  0x17   :  { %318 = vmatpush.bf16.msra.mxu1 %v533_v21  ;;  %v520_v38 = vld [vmem:[%s734_s0 + $0xc] sm:$0xf]  ;;  %v387_v39 = vld [vmem:[%s734_s0 + $0x18] sm:$0xf0]  ;;  %v378_v40 = vor.u32 %v521_v33, %v377_v32  ;;  %v382_v41 = vor.u32 %v519_v34, %v379_v35  ;;  %v386_v42 = vor.u32 %v522_v37, %v385_v36  ;;  %v558_v44 = vld [vmem:[%s736_s2] ss:$0 sm:$0xff] }
  0x18   :  { %332 = vmatpush.bf16.msra.mxu2 %v541_v22  ;;  %v390_v43 = vor.u32 %v520_v38, %v387_v39  ;;  %s585_s0 = smov [#allocation2]   ;;  %s586_s2 = smov 128  }
  0x19   :  { %346 = vmatpush.bf16.msra.mxu3 %v549_v23  ;;  %s361_s12 = sshll.u32 %s585_s0, 4  ;;  %s362_s12 = int_to_ptr.vmem [resolvable:$true] %s361_s12 }
  0x1a   :  { %305 = vmatpush.bf16.msra.mxu0 %v524_v24 }
  0x1b   :  { %319 = vmatpush.bf16.msra.mxu1 %v532_v25 }
  0x1c   :  { %333 = vmatpush.bf16.msra.mxu2 %v540_v26 }
  0x1d   :  { %347 = vmatpush.bf16.msra.mxu3 %v548_v27 }
  0x1e   :  { %306 = vmatpush.bf16.msra.mxu0 %v523_v28 }
  0x1f   :  { %320 = vmatpush.bf16.msra.mxu1 %v531_v29 }
  0x20   :  { %334 = vmatpush.bf16.msra.mxu2 %v539_v30 }
  0x21   :  { %348 = vmatpush.bf16.msra.mxu3 %v547_v31  ;;  %307 = vmatmul.bf16.vlgmr.msra.gmra.mxu0 %v378_v40 }
  0x22   :  { %321 = vmatmul.bf16.vlgmr.msra.gmra.mxu1 %v382_v41 }
  0x23   :  { %335 = vmatmul.bf16.vlgmr.msra.gmra.mxu2 %v386_v42 }
  0x24   :  { %349 = vmatmul.bf16.vlgmr.msra.gmra.mxu3 %v390_v43 }
  0x9e   :  { %v308_v45 = vpop.f32.mrf.mxu0 }
  0x9f   :  { %v309_v46 = vadd.f32 %v558_v44, %v308_v45  ;;  %v322_v47 = vpop.f32.mrf.mxu1 }
  0xa1   :  { %v323_v48 = vadd.f32 %v322_v47, %v309_v46 }
  0xa6   :  { %v336_v49 = vpop.f32.mrf.mxu2  ;;  %v310_v52 = vpop.f32.mrf.mxu0 }
  0xa7   :  { %v350_v50 = vpop.f32.mrf.mxu3  ;;  %v337_v51 = vadd.f32 %v336_v49, %v323_v48  ;;  %v311_v54 = vadd.f32 %v558_v44, %v310_v52  ;;  %v324_v55 = vpop.f32.mrf.mxu1 }
  0xa9   :  { %v351_v53 = vadd.f32 %v350_v50, %v337_v51  ;;  %v325_v56 = vadd.f32 %v324_v55, %v311_v54 }
  0xab   :  { %355 = vst [vmem:[#allocation2] sm:$0xff] %v351_v53 }
  0xae   :  { %v338_v57 = vpop.f32.mrf.mxu2 }
  0xaf   :  { %v339_v58 = vadd.f32 %v338_v57, %v325_v56  ;;  %v352_v59 = vpop.f32.mrf.mxu3 }
  0xb1   :  { %v353_v60 = vadd.f32 %v352_v59, %v339_v58 }
  0xb3   :  { %356 = vst [vmem:[#allocation2 + $0x8] sm:$0xff] %v353_v60 }
  0xb4   :  { %369 = dma.vmem_to_hbm [thread:$0]  %s362_s12, 256, %s364_s15, [#allocation3], %s586_s2, %s586_s2, %s587_s16  }
  0xb5   :  { %583 = dma.done.wait [#allocation3], 256  }
  0xb6   :  { %584 = vsyncadd [#allocation3], 4294967040 }
  0xb7   :  { %374 = vsyncpa [#allocation3], 1 }

</bundles_post_ra>
